<compile_context>
chip_gen: v7x
topology: tpu7x:2x2x1
jax: 0.10.0
libtpu: 0.0.40
codegen_flags: <defaults>
</compile_context>

<pallas_src>
import jax
import jax.numpy as jnp
from jax.experimental import pallas as pl
from jax.experimental.pallas import tpu as pltpu

LANES = 128
MAX_TILE_ROWS = 2048  # 2048 x 128 f32 = 1 MiB per block; double-buffered = 2 MiB


def _sum3_kernel(x_ref, o_ref, acc_ref):
    i = pl.program_id(0)

    @pl.when(i == 0)
    def _():
        acc_ref[...] = jnp.zeros_like(acc_ref)

    # Lane-parallel running partial: VPU adds across vregs + one sublane reduce.
    x = x_ref[...].astype(jnp.float32)
    acc_ref[...] += jnp.sum(x, axis=0, keepdims=True)

    @pl.when(i == pl.num_programs(0) - 1)
    def _():
        # v + y + z with v == y == z  ->  3 * sum(x). One cross-lane reduce total.
        o_ref[...] = (jnp.sum(acc_ref[...]) * 3.0).reshape(1, 1)


def _prepare_2d(a):
    """Flatten to a lane-dense [rows, 128] slab; pad (sum-neutral zeros) only if needed."""
    flat = a.reshape(-1)
    n = flat.shape[0]
    rem = n % LANES
    if rem != 0:
        flat = jnp.pad(flat, (0, LANES - rem))
    return flat.reshape(-1, LANES)


def model_forward(x_dict):
    """Reproduces Model.forward: sum(v + y + z) where v, y, z alias the first dict value."""
    first = list(x_dict.keys())[0]
    v = x_dict[first]
    # y = list(x.values())[0] and z = list(x.items())[0][1] alias the same tensor,
    # so the kernel streams it once and scales the reduction by 3.
    _y = list(x_dict.values())[0]
    _z = list(x_dict.items())[0][1]

    x2 = _prepare_2d(v)
    rows = x2.shape[0]

    if rows <= MAX_TILE_ROWS:
        # Whole slab as one block -> single grid step, no per-step overhead.
        tile_rows = rows
    else:
        tile_rows = MAX_TILE_ROWS
        rem = rows % tile_rows
        if rem != 0:
            x2 = jnp.pad(x2, ((0, tile_rows - rem), (0, 0)))  # sum-neutral zeros
            rows = x2.shape[0]

    grid = (rows // tile_rows,)

    out = pl.pallas_call(
        _sum3_kernel,
        out_shape=jax.ShapeDtypeStruct((1, 1), jnp.float32),
        grid_spec=pltpu.PrefetchScalarGridSpec(
            num_scalar_prefetch=0,
            grid=grid,
            in_specs=[pl.BlockSpec((tile_rows, LANES), lambda i: (i, 0))],
            out_specs=pl.BlockSpec((1, 1), lambda i: (0, 0)),
            scratch_shapes=[pltpu.VMEM((1, LANES), jnp.float32)],
        ),
        compiler_params=pltpu.CompilerParams(
            dimension_semantics=("arbitrary",),  # reduction axis; output resident
        ),
    )(x2)

    result = out[0, 0]  # 0-d, matches torch.sum()
    if jnp.issubdtype(v.dtype, jnp.floating):
        result = result.astype(v.dtype)
    return result


if __name__ == "__main__":
    key = jax.random.PRNGKey(0)
    x = jax.random.normal(key, (2, 4, 16, 16), dtype=jnp.float32)
    x_dict = {"input": x}

    result = model_forward(x_dict)
    result = jax.block_until_ready(result)

    # Reference check in plain JAX.
    ref = jnp.sum(x + x + x)
    assert jnp.allclose(result, ref, rtol=1e-5, atol=1e-5), (result, ref)

    print("KERNEL_OK")
</pallas_src>

<mosaic_0001>
module attributes {stable_mosaic.version = 11 : i64} {
  func.func @_sum3_kernel(%arg0: i32, %arg1: memref<16x128xf32, #tpu.memory_space<vmem>>, %arg2: memref<1x1xf32, #tpu.memory_space<vmem>>, %arg3: memref<1x128xf32, #tpu.memory_space<vmem>>) attributes {dimension_semantics = [#tpu.dimension_semantics<arbitrary>], iteration_bounds = array<i64: 1>, scalar_prefetch = 0 : i64, scratch_operands = 1 : i64, tpu.core_type = #tpu.core_type<tc>, window_params = [{transform_indices = @transform_0, window_bounds = array<i64: 16, 128>}, {pipeline_mode = #tpu.pipeline_mode<synchronous>, transform_indices = @transform_1, window_bounds = array<i64: 1, 1>}]} {
    %c0_i32 = arith.constant 0 : i32
    %0 = arith.cmpi eq, %arg0, %c0_i32 : i32
    %1 = arith.extui %0 : i1 to i32
    %c0_i32_0 = arith.constant 0 : i32
    %2 = arith.cmpi ne, %1, %c0_i32_0 : i32
    scf.if %2 {
      %cst_8 = arith.constant 0.000000e+00 : f32
      %12 = vector.broadcast %cst_8 : f32 to vector<1x128xf32>
      %c0_9 = arith.constant 0 : index
      %c0_10 = arith.constant 0 : index
      %13 = vector.load %arg3[%c0_9, %c0_10] : memref<1x128xf32, #tpu.memory_space<vmem>>, vector<1x128xf32>
      tpu.vector_store %arg3[%c0_9, %c0_10], %12 {strides = array<i32>} : memref<1x128xf32, #tpu.memory_space<vmem>>, vector<1x128xf32>,
    } else {
    }
    %c0 = arith.constant 0 : index
    %c0_1 = arith.constant 0 : index
    %3 = vector.load %arg1[%c0, %c0_1] : memref<16x128xf32, #tpu.memory_space<vmem>>, vector<16x128xf32>
    %c0_2 = arith.constant 0 : index
    %c0_3 = arith.constant 0 : index
    %4 = vector.load %arg3[%c0_2, %c0_3] : memref<1x128xf32, #tpu.memory_space<vmem>>, vector<1x128xf32>
    %cst = arith.constant dense<0.000000e+00> : vector<128xf32>
    %5 = vector.multi_reduction <add>, %3, %cst [0] : vector<16x128xf32> to vector<128xf32>
    %6 = vector.shape_cast %5 : vector<128xf32> to vector<1x128xf32>
    %7 = arith.addf %4, %6 : vector<1x128xf32>
    %c0_4 = arith.constant 0 : index
    %c0_5 = arith.constant 0 : index
    %8 = vector.load %arg3[%c0_4, %c0_5] : memref<1x128xf32, #tpu.memory_space<vmem>>, vector<1x128xf32>
    tpu.vector_store %arg3[%c0_4, %c0_5], %7 {strides = array<i32>} : memref<1x128xf32, #tpu.memory_space<vmem>>, vector<1x128xf32>,
    %c0_i32_6 = arith.constant 0 : i32
    %9 = arith.cmpi eq, %arg0, %c0_i32_6 : i32
    %10 = arith.extui %9 : i1 to i32
    %c0_i32_7 = arith.constant 0 : i32
    %11 = arith.cmpi ne, %10, %c0_i32_7 : i32
    scf.if %11 {
      %c0_8 = arith.constant 0 : index
      %c0_9 = arith.constant 0 : index
      %12 = vector.load %arg3[%c0_8, %c0_9] : memref<1x128xf32, #tpu.memory_space<vmem>>, vector<1x128xf32>
      %13 = vector.shape_cast %12 : vector<1x128xf32> to vector<1x1x128xf32>
      %cst_10 = arith.constant dense<0.000000e+00> : vector<1xf32>
      %14 = vector.multi_reduction <add>, %13, %cst_10 [1, 2] : vector<1x1x128xf32> to vector<1xf32>
      %15 = vector.shape_cast %14 : vector<1xf32> to vector<1x1x1xf32>
      %16 = vector.extract %15[0, 0, 0] : f32 from vector<1x1x1xf32>
      %cst_11 = arith.constant 3.000000e+00 : f32
      %17 = arith.mulf %16, %cst_11 : f32
      %18 = vector.broadcast %17 : f32 to vector<1x1xf32>
      %c0_12 = arith.constant 0 : index
      %c0_13 = arith.constant 0 : index
      %19 = vector.load %arg2[%c0_12, %c0_13] : memref<1x1xf32, #tpu.memory_space<vmem>>, vector<1x1xf32>
      tpu.vector_store %arg2[%c0_12, %c0_13], %18 {strides = array<i32>} : memref<1x1xf32, #tpu.memory_space<vmem>>, vector<1x1xf32>,
    } else {
    }
    return
  }
  func.func @transform_0(%arg0: i32) -> (i32, i32) {
    %c0_i32 = arith.constant 0 : i32
    %c0_i32_0 = arith.constant 0 : i32
    return %arg0, %c0_i32 : i32, i32
  }
  func.func @transform_1(%arg0: i32) -> (i32, i32) {
    %c0_i32 = arith.constant 0 : i32
    %c0_i32_0 = arith.constant 0 : i32
    %c0_i32_1 = arith.constant 0 : i32
    return %c0_i32, %c0_i32_0 : i32, i32
  }
}

</mosaic_0001>

<bundles_post_ra>
// kernel: tpu_custom_call.1
= control target key start
LH: loop header
LB: loop body
LE: loop exit
PB: predicated region body
PF: predicated region fallthrough
CT: control target
= control target key end

     0   :  { %6 = vsyncpa [#allocation4], 0  ;;  %s168_s0 = inlined_call_operand.hbm [shape: f32[16,128], index: 0, kind: input, shape index: {}]   ;;  %s169_s1 = inlined_call_operand.hbm [shape: f32[1,1], index: 1, kind: output, shape index: {}]  }
   0x1   :  { %7 = vsyncpa [#allocation5], 0  ;;  %s129_s6 = smov [#allocation3]   ;;  %s81_s10 = scalar_lea.hbm %s168_s0, 256 }
   0x2   :  { %s13_s7 = sshll.u32 %s129_s6, 4  ;;  %p82_p0 = scmp.ne.s32.totalorder %s168_s0, %s81_s10  ;;  %s14_s7 = int_to_ptr.vmem [resolvable:$true] %s13_s7 }
   0x3   :  { %p85_p1 = scmp.lt.u32.totalorder %s81_s10, %s168_s0 }
   0x5   :  { %p87_p2 = pnand %p85_p1, %p82_p0 }
   0x7   :  { %90 = shalt.err (!%p87_p2)
}
   0x8   :  { %s91_s15 = scalar_lea.vmem %s14_s7, 256  ;;  %p96_p4 = scmp.lt.s32.totalorder %s14_s7, %s14_s7 }
   0x9   :  { %p92_p3 = scmp.ne.s32.totalorder %s14_s7, %s91_s15  ;;  %p97_p5 = scmp.lt.s32.totalorder %s91_s15, %s91_s15 }
   0xb   :  { %p98_p6 = por %p97_p5, %p96_p4 }
   0xd   :  { %p99_p7 = pnand %p98_p6, %p92_p3 }
   0xf   :  { %102 = shalt.err (!%p99_p7)
}
  0x10   :  { %s130_s16 = smov 128   ;;  %s131_s17 = smov 8  }
  0x11   :  { %19 = dma.hbm_to_vmem [thread:$0]  %s168_s0, 256, %s14_s7, [#allocation4], %s130_s16, %s130_s16, %s131_s17  }
  0x12   :  { %125 = dma.done.wait [#allocation4], 256  }
  0x13   :  { %126 = vsyncadd [#allocation4], 4294967040  ;;  %v132_v0 = vmov 0.0   ;;  %v28_v1 = vld [vmem:[#allocation3] sm:$0xff]  ;;  %v29_v2 = vld [vmem:[#allocation3 + $0x8] sm:$0xff]  ;;  %vm44_vm0 = vcmask 1040384  }
  0x14   :  { %27 = vst [vmem:[#allocation2] sm:$0x1] %v132_v0  ;;  %v31_v3 = vadd.f32 %v29_v2, %v28_v1  ;;  %s133_s0 = smov [#allocation6]   ;;  %vm57_vm1 = vcmask 0  }
  0x15   :  { %s65_s20 = sshll.u32 %s133_s0, 4  ;;  %s66_s20 = int_to_ptr.vmem [resolvable:$true] %s65_s20 }
  0x16   :  { %v32_v4 = vrot.slane %v31_v3, 4  ;;  %s103_s23 = scalar_lea.vmem %s66_s20, 16  ;;  %s107_s24 = scalar_lea.vmem %s66_s20, 32 }
  0x17   :  { %p104_p8 = scmp.ne.s32.totalorder %s66_s20, %s103_s23  ;;  %p108_p9 = scmp.lt.s32.totalorder %s66_s20, %s66_s20 }
  0x18   :  { %v33_v5 = vadd.f32 %v32_v4, %v31_v3  ;;  %p109_p10 = scmp.lt.s32.totalorder %s107_s24, %s103_s23 }
  0x1a   :  { %v34_v6 = vrot.slane %v33_v5, 2  ;;  %p110_p11 = por %p109_p10, %p108_p9 }
  0x1b   :  { %v30_v9 = vld [vmem:[#allocation2] sm:$0x1] }
  0x1c   :  { %v35_v7 = vadd.f32 %v34_v6, %v33_v5  ;;  %p111_p12 = pnand %p110_p11, %p104_p8 }
  0x1e   :  { %v36_v8 = vrot.slane %v35_v7, 1 }
  0x20   :  { %v37_v10 = vadd.f32 %v36_v8, %v35_v7 }
  0x22   :  { %v38_v11 = vadd.f32 %v37_v10, %v30_v9 }
  0x24   :  { %39 = vst [vmem:[#allocation2] sm:$0x1] %v38_v11 }
  0x2b   :  { %v43_v12 = vld [vmem:[#allocation2] sm:$0x1] }
  0x2c   :  { %v45_v13 = vsel %vm44_vm0, %v43_v12, 0.0 }
  0x2d   :  { %46 = vadd.xlane.f32.xlu0 %v45_v13 }
  0xba   :  { %v47_v14 = vpop.xlane.xlu0 %46 }
  0xbb   :  { %v48_v15 = vrot.slane %v47_v14, 4 }
  0xbd   :  { %v49_v16 = vadd.f32 %v48_v15, %v47_v14 }
  0xbf   :  { %v50_v17 = vrot.slane %v49_v16, 2 }
  0xc1   :  { %v51_v18 = vadd.f32 %v50_v17, %v49_v16 }
  0xc3   :  { %v52_v19 = vrot.slane %v51_v18, 1 }
  0xc5   :  { %v53_v20 = vadd.f32 %v52_v19, %v51_v18 }
  0xc7   :  { %74 = vpush %v53_v20 }
  0xf8   :  { %s75_s21 = spop %74 }
  0xf9   :  { %s55_s22 = smul.f32 3.0, %s75_s21 }
  0xfb   :  { %v56_v21 = vstv %s55_s22 }
  0xfc   :  { %58 = vst.msk [vmem:[#allocation6] sm:$0x1] %vm57_vm1, %v56_v21 }
  0xfd   :  { %114 = shalt.err (!%p111_p12)
}
  0xfe   :  { %s115_s27 = scalar_lea.hbm %s169_s1, 16 }
  0xff   :  { %p116_p13 = scmp.ne.s32.totalorder %s169_s1, %s115_s27  ;;  %p119_p0 = scmp.lt.u32.totalorder %s115_s27, %s169_s1 }
 0x101   :  { %p121_p1 = pnand %p119_p0, %p116_p13 }
 0x103   :  { %124 = shalt.err (!%p121_p1)
}
 0x104   :  { %68 = dma.vmem_to_hbm [thread:$0]  %s66_s20, 16, %s169_s1, [#allocation5]  }
 0x105   :  { %127 = dma.done.wait [#allocation5], 16  }
 0x106   :  { %128 = vsyncadd [#allocation5], 4294967280 }
 0x107   :  { %72 = vsyncpa [#allocation4], 1 }
 0x108   :  { %73 = vsyncpa [#allocation5], 1 }

</bundles_post_ra>
